<compile_context>
chip_gen: v6e
topology: v6e:2x2x1
jax: 0.10.0
libtpu: 0.0.40
codegen_flags: <defaults>
</compile_context>

<pallas_src>
import functools
import math

import jax
import jax.numpy as jnp
from jax import lax
from jax.experimental import pallas as pl
from jax.experimental.pallas import tpu as pltpu

EPS = 1e-5

_DEFAULT_SCOPED_VMEM = 32 << 20      # v6e/v7x default scoped limit (v5e: 16 MiB)
_MAX_INPUT_BUF_BYTES = 16 << 20      # byte-based row-tile cap (per input buffer)
_MIN_GRID_STEPS = 4                  # keep pipeline overlap + 2-TC sharding alive


def _get_vmem_capacity():
    """Physical VMEM per TensorCore; conservative fallback if query fails."""
    try:
        cap = int(pltpu.get_tpu_info().vmem_capacity_bytes)
        if cap > 0:
            return cap
    except Exception:
        pass
    return 64 << 20  # safe for all of v5e / v6e / v7x


def _supports_bf16_valu():
    """v6e/v7x have bf16 VALU; v5e (and older) do not."""
    try:
        kind = jax.devices()[0].device_kind.lower()
    except Exception:
        return False
    for old in ("v2", "v3", "v4", "v5"):
        if old in kind:
            return False
    return True


def _make_ln_kernel(has_bias, tail_in_io_dtype):
    """Build a LayerNorm kernel body.

    Statistics (mean/var/rsqrt) are always accumulated in f32. When
    `tail_in_io_dtype` is set (bf16 input on a bf16-VALU chip), the final
    normalize/scale/bias runs in the I/O dtype to halve VPU work and f32
    scratch.
    """
    if has_bias:
        def kernel(x_ref, w_ref, b_ref, o_ref):
            # x_ref: (row_tile, n_embd); w_ref/b_ref: (1, n_embd)
            x = x_ref[...].astype(jnp.float32)
            mean = jnp.mean(x, axis=-1, keepdims=True)
            xc = x - mean
            var = jnp.mean(xc * xc, axis=-1, keepdims=True)
            inv = lax.rsqrt(var + EPS)
            if tail_in_io_dtype:
                io_dt = o_ref.dtype
                y = xc.astype(io_dt) * inv.astype(io_dt)
                o_ref[...] = y * w_ref[...].astype(io_dt) + b_ref[...].astype(io_dt)
            else:
                w = w_ref[...].astype(jnp.float32)
                b = b_ref[...].astype(jnp.float32)
                o_ref[...] = (xc * (inv * w) + b).astype(o_ref.dtype)
        return kernel

    def kernel(x_ref, w_ref, o_ref):
        x = x_ref[...].astype(jnp.float32)
        mean = jnp.mean(x, axis=-1, keepdims=True)
        xc = x - mean
        var = jnp.mean(xc * xc, axis=-1, keepdims=True)
        inv = lax.rsqrt(var + EPS)
        if tail_in_io_dtype:
            io_dt = o_ref.dtype
            y = xc.astype(io_dt) * inv.astype(io_dt)
            o_ref[...] = y * w_ref[...].astype(io_dt)
        else:
            w = w_ref[...].astype(jnp.float32)
            o_ref[...] = (xc * (inv * w)).astype(o_ref.dtype)
    return kernel


def _pick_row_tile(rows, n_embd, itemsize, vmem_capacity):
    """Largest dtype-aligned row tile that fits the generation-aware budget,
    keeps a multi-step grid, and respects a per-buffer byte cap."""
    # Sublane packing: second-to-last block dim must be a multiple of the
    # native packed sublane tile for the dtype.
    sublane = {4: 8, 2: 16, 1: 32}.get(itemsize, 8)

    # ~40% of physical VMEM for the pipelined working set:
    #   double-buffered input + output tiles (2 bufs each) plus ~3 full-tile
    #   f32 temporaries in the body (x upcast, xc, broadcast product).
    budget = (vmem_capacity * 2) // 5
    per_row = n_embd * (4 * itemsize + 3 * 4)
    tile = budget // max(per_row, 1)

    # Byte-based cap on a single input buffer (replaces fixed 4096-row cap).
    tile = min(tile, _MAX_INPUT_BUF_BYTES // max(n_embd * itemsize, 1))

    tile = max(sublane, (tile // sublane) * sublane)

    rows_aligned = ((rows + sublane - 1) // sublane) * sublane

    # Grid-length floor: keep >= _MIN_GRID_STEPS steps (when the problem is
    # big enough) so the BlockSpec double-buffer actually overlaps and, on
    # v7x, both TensorCores get grid iterations.
    if rows_aligned >= _MIN_GRID_STEPS * sublane:
        cap = (rows_aligned // _MIN_GRID_STEPS // sublane) * sublane
        tile = min(tile, max(cap, sublane))

    tile = min(tile, rows_aligned)
    return max(tile, sublane)


@functools.partial(jax.jit, static_argnames=("row_tile",))
def layer_norm(x, weight, bias=None, *, row_tile=None):
    """LayerNorm over the last axis of x (matches F.layer_norm with eps=1e-5).

    x:      (..., n_embd)
    weight: (n_embd,)
    bias:   (n_embd,) or None
    """
    orig_shape = x.shape
    n_embd = orig_shape[-1]
    rows = math.prod(orig_shape[:-1]) if len(orig_shape) > 1 else 1
    x2 = x.reshape(rows, n_embd)

    itemsize = jnp.dtype(x.dtype).itemsize
    vmem_capacity = _get_vmem_capacity()
    if row_tile is None:
        row_tile = _pick_row_tile(rows, n_embd, itemsize, vmem_capacity)

    grid = (pl.cdiv(rows, row_tile),)

    # Scoped VMEM limit: what this tiling actually needs, never above the
    # physical capacity minus headroom (v7x has only 64 MiB per TC).
    pipeline_bytes = 4 * row_tile * n_embd * itemsize      # in + out, 2 bufs each
    temp_bytes = 3 * row_tile * n_embd * 4                 # f32 working set
    need = pipeline_bytes + temp_bytes + (4 << 20)
    ceiling = max(_DEFAULT_SCOPED_VMEM, vmem_capacity - (16 << 20))
    vmem_limit = int(min(max(_DEFAULT_SCOPED_VMEM, need), ceiling))

    compiler_params = pltpu.CompilerParams(
        dimension_semantics=("parallel",),  # lets v7x shard rows across 2 TCs
        vmem_limit_bytes=vmem_limit,
    )

    # Advisory cost hint for XLA scheduling around this mem-bound call.
    param_bytes = n_embd * itemsize * (2 if bias is not None else 1)
    cost = pl.CostEstimate(
        flops=8 * rows * n_embd,
        transcendentals=rows,
        bytes_accessed=2 * rows * n_embd * itemsize + param_bytes,
    )

    # bf16 tail only on chips with bf16 VALU (v6e/v7x); v5e keeps full f32.
    tail_in_io_dtype = (x.dtype == jnp.bfloat16) and _supports_bf16_valu()

    x_spec = pl.BlockSpec((row_tile, n_embd), lambda i: (i, 0))
    p_spec = pl.BlockSpec((1, n_embd), lambda i: (0, 0))
    o_spec = pl.BlockSpec((row_tile, n_embd), lambda i: (i, 0))
    out_shape = jax.ShapeDtypeStruct((rows, n_embd), x.dtype)

    w2 = weight.reshape(1, n_embd)

    if bias is not None:
        b2 = bias.reshape(1, n_embd)
        kernel = _make_ln_kernel(has_bias=True, tail_in_io_dtype=tail_in_io_dtype)
        out = pl.pallas_call(
            kernel,
            out_shape=out_shape,
            grid_spec=pltpu.PrefetchScalarGridSpec(
                num_scalar_prefetch=0,
                grid=grid,
                in_specs=[x_spec, p_spec, p_spec],
                out_specs=o_spec,
            ),
            compiler_params=compiler_params,
            cost_estimate=cost,
        )(x2, w2, b2)
    else:
        kernel = _make_ln_kernel(has_bias=False, tail_in_io_dtype=tail_in_io_dtype)
        out = pl.pallas_call(
            kernel,
            out_shape=out_shape,
            grid_spec=pltpu.PrefetchScalarGridSpec(
                num_scalar_prefetch=0,
                grid=grid,
                in_specs=[x_spec, p_spec],
                out_specs=o_spec,
            ),
            compiler_params=compiler_params,
            cost_estimate=cost,
        )(x2, w2)

    return out.reshape(orig_shape)


def _ref_layer_norm(x, w, b):
    xf = x.astype(jnp.float32)
    mean = jnp.mean(xf, axis=-1, keepdims=True)
    var = jnp.mean((xf - mean) ** 2, axis=-1, keepdims=True)
    y = (xf - mean) * lax.rsqrt(var + EPS) * w.astype(jnp.float32)
    if b is not None:
        y = y + b.astype(jnp.float32)
    return y.astype(x.dtype)


if __name__ == "__main__":
    key = jax.random.PRNGKey(0)
    k0, k1 = jax.random.split(key)

    batch, seq, n_embd = 2, 8, 32
    x = jax.random.normal(k0, (batch, seq, n_embd), dtype=jnp.float32)

    # Deterministic parameter init matching the module's __init__:
    # weight = ones(n_embd), bias = zeros(n_embd) when bias=True.
    weight = jnp.ones((n_embd,), dtype=jnp.float32)
    bias = jnp.zeros((n_embd,), dtype=jnp.float32)

    # bias=True path
    y = layer_norm(x, weight, bias)
    jax.block_until_ready(y)
    assert jnp.allclose(y, _ref_layer_norm(x, weight, bias), atol=1e-5, rtol=1e-5)

    # bias=False path (parameter registered as None) -> separate no-bias kernel
    y_nb = layer_norm(x, weight, None)
    jax.block_until_ready(y_nb)
    assert jnp.allclose(y_nb, _ref_layer_norm(x, weight, None), atol=1e-5, rtol=1e-5)

    # rows not a multiple of the sublane tile -> exercises the partial
    # boundary block (masked writeback) with no host-side pad/slice.
    x_odd = jax.random.normal(k1, (3, 5, n_embd), dtype=jnp.float32)
    y_odd = layer_norm(x_odd, weight, bias)
    jax.block_until_ready(y_odd)
    assert jnp.allclose(y_odd, _ref_layer_norm(x_odd, weight, bias),
                        atol=1e-5, rtol=1e-5)

    # larger problem -> exercises the multi-step grid / tile-size heuristic
    x_big = jax.random.normal(k1, (64, 128, n_embd), dtype=jnp.float32)
    y_big = layer_norm(x_big, weight, bias)
    jax.block_until_ready(y_big)
    assert jnp.allclose(y_big, _ref_layer_norm(x_big, weight, bias),
                        atol=1e-5, rtol=1e-5)

    print("KERNEL_OK")
</pallas_src>

<mosaic_0001>
module attributes {stable_mosaic.version = 11 : i64} {
  func.func @kernel(%arg0: i32, %arg1: memref<16x32xf32, #tpu.memory_space<vmem>>, %arg2: memref<1x32xf32, #tpu.memory_space<vmem>>, %arg3: memref<1x32xf32, #tpu.memory_space<vmem>>, %arg4: memref<16x32xf32, #tpu.memory_space<vmem>>) attributes {dimension_semantics = [#tpu.dimension_semantics<parallel>], iteration_bounds = array<i64: 1>, scalar_prefetch = 0 : i64, scratch_operands = 0 : i64, tpu.core_type = #tpu.core_type<tc>, window_params = [{transform_indices = @transform_0, window_bounds = array<i64: 16, 32>}, {pipeline_mode = #tpu.pipeline_mode<synchronous>, transform_indices = @transform_1, window_bounds = array<i64: 1, 32>}, {pipeline_mode = #tpu.pipeline_mode<synchronous>, transform_indices = @transform_2, window_bounds = array<i64: 1, 32>}, {transform_indices = @transform_3, window_bounds = array<i64: 16, 32>}]} {
    %c0 = arith.constant 0 : index
    %c0_0 = arith.constant 0 : index
    %0 = vector.load %arg1[%c0, %c0_0] : memref<16x32xf32, #tpu.memory_space<vmem>>, vector<16x32xf32>
    %cst = arith.constant dense<0.000000e+00> : vector<16xf32>
    %1 = vector.multi_reduction <add>, %0, %cst [1] : vector<16x32xf32> to vector<16xf32>
    %2 = vector.shape_cast %1 : vector<16xf32> to vector<16x1xf32>
    %cst_1 = arith.constant 3.200000e+01 : f32
    %3 = vector.broadcast %cst_1 : f32 to vector<16x1xf32>
    %4 = arith.divf %2, %3 : vector<16x1xf32>
    %5 = vector.broadcast %4 : vector<16x1xf32> to vector<16x32xf32>
    %6 = arith.subf %0, %5 : vector<16x32xf32>
    %7 = arith.mulf %6, %6 : vector<16x32xf32>
    %cst_2 = arith.constant dense<0.000000e+00> : vector<16xf32>
    %8 = vector.multi_reduction <add>, %7, %cst_2 [1] : vector<16x32xf32> to vector<16xf32>
    %9 = vector.shape_cast %8 : vector<16xf32> to vector<16x1xf32>
    %cst_3 = arith.constant 3.200000e+01 : f32
    %10 = vector.broadcast %cst_3 : f32 to vector<16x1xf32>
    %11 = arith.divf %9, %10 : vector<16x1xf32>
    %cst_4 = arith.constant 9.99999974E-6 : f32
    %12 = vector.broadcast %cst_4 : f32 to vector<16x1xf32>
    %13 = arith.addf %11, %12 : vector<16x1xf32>
    %14 = math.rsqrt %13 : vector<16x1xf32>
    %c0_5 = arith.constant 0 : index
    %c0_6 = arith.constant 0 : index
    %15 = vector.load %arg2[%c0_5, %c0_6] : memref<1x32xf32, #tpu.memory_space<vmem>>, vector<1x32xf32>
    %c0_7 = arith.constant 0 : index
    %c0_8 = arith.constant 0 : index
    %16 = vector.load %arg3[%c0_7, %c0_8] : memref<1x32xf32, #tpu.memory_space<vmem>>, vector<1x32xf32>
    %17 = vector.broadcast %14 : vector<16x1xf32> to vector<16x32xf32>
    %18 = vector.broadcast %15 : vector<1x32xf32> to vector<16x32xf32>
    %19 = arith.mulf %17, %18 : vector<16x32xf32>
    %20 = arith.mulf %6, %19 : vector<16x32xf32>
    %21 = vector.broadcast %16 : vector<1x32xf32> to vector<16x32xf32>
    %22 = arith.addf %20, %21 : vector<16x32xf32>
    %c0_9 = arith.constant 0 : index
    %c0_10 = arith.constant 0 : index
    %23 = vector.load %arg4[%c0_9, %c0_10] : memref<16x32xf32, #tpu.memory_space<vmem>>, vector<16x32xf32>
    tpu.vector_store %arg4[%c0_9, %c0_10], %22 {strides = array<i32>} : memref<16x32xf32, #tpu.memory_space<vmem>>, vector<16x32xf32>,
    return
  }
  func.func @transform_0(%arg0: i32) -> (i32, i32) {
    %c0_i32 = arith.constant 0 : i32
    %c0_i32_0 = arith.constant 0 : i32
    return %arg0, %c0_i32 : i32, i32
  }
  func.func @transform_1(%arg0: i32) -> (i32, i32) {
    %c0_i32 = arith.constant 0 : i32
    %c0_i32_0 = arith.constant 0 : i32
    %c0_i32_1 = arith.constant 0 : i32
    return %c0_i32, %c0_i32_0 : i32, i32
  }
  func.func @transform_2(%arg0: i32) -> (i32, i32) {
    %c0_i32 = arith.constant 0 : i32
    %c0_i32_0 = arith.constant 0 : i32
    %c0_i32_1 = arith.constant 0 : i32
    return %c0_i32, %c0_i32_0 : i32, i32
  }
  func.func @transform_3(%arg0: i32) -> (i32, i32) {
    %c0_i32 = arith.constant 0 : i32
    %c0_i32_0 = arith.constant 0 : i32
    return %arg0, %c0_i32 : i32, i32
  }
}

</mosaic_0001>

<bundles_post_ra>
// kernel: layer_norm.1
= control target key start
LH: loop header
LB: loop body
LE: loop exit
PB: predicated region body
PF: predicated region fallthrough
CT: control target
= control target key end

     0   :  { %8 = vsyncpa [#allocation3], 0  ;;  %s198_s0 = inlined_call_operand.hbm [shape: f32[16,32], index: 0, kind: input, shape index: {}]   ;;  %s199_s1 = inlined_call_operand.vmem [shape: f32[1,32], index: 1, kind: input, shape index: {}]   ;;  %s200_s2 = inlined_call_operand.vmem [shape: f32[1,32], index: 2, kind: input, shape index: {}]   ;;  %s201_s3 = inlined_call_operand.hbm [shape: f32[16,32], index: 3, kind: output, shape index: {}]  }
   0x1   :  { %9 = vsyncpa [#allocation4], 0  ;;  %s150_s12 = smov [#allocation2]  }
   0x2   :  { %s15_s13 = sshll.u32 %s150_s12, 4  ;;  %s16_s13 = int_to_ptr.vmem [resolvable:$true] %s15_s13 }
   0x3   :  { %s114_s14 = scalar_lea.vmem %s16_s13, 256  ;;  %p119_p1 = scmp.lt.s32.totalorder %s16_s13, %s16_s13 }
   0x4   :  { %p115_p0 = scmp.ne.s32.totalorder %s16_s13, %s114_s14  ;;  %p120_p2 = scmp.lt.s32.totalorder %s114_s14, %s114_s14 }
   0x6   :  { %p121_p3 = por %p120_p2, %p119_p1 }
   0x8   :  { %p122_p4 = pnand %p121_p3, %p115_p0 }
   0xa   :  { %125 = shalt.err (!%p122_p4)
}
   0xb   :  { %s151_s15 = smov 128   ;;  %s152_s16 = smov 8  }
   0xc   :  { %21 = dma.hbm_to_vmem [thread:$0]  %s198_s0, 256, %s16_s13, [#allocation3], %s151_s15, %s151_s15, %s152_s16  }
   0xd   :  { %146 = dma.done.wait [#allocation3], 256  }
   0xe   :  { %147 = vsyncadd [#allocation3], 4294967040  ;;  %vm31_vm0 = vcmask 261120   ;;  %v29_v0 = vld [vmem:[#allocation2] sm:$0xff]  ;;  %v30_v1 = vld [vmem:[#allocation2 + $0x8] sm:$0xff]  ;;  %s153_s22 = smov [#allocation5]  }
   0xf   :  { %v32_v2 = vsel %vm31_vm0, %v29_v0, 0.0  ;;  %v35_v3 = vsel %vm31_vm0, %v30_v1, 0.0  ;;  %v96_v20 = vld [vmem:[%s199_s1] ss:$0 sm:$0xff]  ;;  %s84_s23 = sshll.u32 %s153_s22, 4  ;;  %s85_s23 = int_to_ptr.vmem [resolvable:$true] %s84_s23 }
  0x10   :  { %33 = vadd.xlane.f32.xlu0 %v32_v2  ;;  %v97_v23 = vld [vmem:[%s200_s2] ss:$0 sm:$0xff]  ;;  %s126_s1 = scalar_lea.vmem %s85_s23, 256  ;;  %p131_p6 = scmp.lt.s32.totalorder %s85_s23, %s85_s23 }
  0x11   :  { %p127_p5 = scmp.ne.s32.totalorder %s85_s23, %s126_s1  ;;  %p132_p7 = scmp.lt.s32.totalorder %s126_s1, %s126_s1 }
  0x13   :  { %p133_p8 = por %p132_p7, %p131_p6 }
  0x14   :  { %36 = vadd.xlane.f32.xlu0 %v35_v3 }
  0x15   :  { %p134_p9 = pnand %p133_p8, %p127_p5 }
  0x99   :  { %v34_v4 = vpop.xlane.xlu0 %33 }
  0x9a   :  { %v39_v5 = vmul.f32 0.03125, %v34_v4 }
  0x9c   :  { %v41_v6 = vsub.f32 %v29_v0, %v39_v5 }
  0x9d   :  { %v37_v7 = vpop.xlane.xlu0 %36 }
  0x9e   :  { %v40_v8 = vmul.f32 0.03125, %v37_v7  ;;  %v43_v9 = vmul.f32 %v41_v6, %v41_v6 }
  0xa0   :  { %v42_v10 = vsub.f32 %v30_v1, %v40_v8  ;;  %v45_v11 = vsel %vm31_vm0, %v43_v9, 0.0 }
  0xa1   :  { %46 = vadd.xlane.f32.xlu1 %v45_v11 }
  0xa2   :  { %v44_v12 = vmul.f32 %v42_v10, %v42_v10 }
  0xa4   :  { %v48_v13 = vsel %vm31_vm0, %v44_v12, 0.0 }
  0xa5   :  { %49 = vadd.xlane.f32.xlu1 %v48_v13 }
 0x12a   :  { %v47_v14 = vpop.xlane.xlu1 %46 }
 0x12b   :  { %v51_v15 = vmul.f32 0.03125, %v47_v14 }
 0x12d   :  { %v53_v16 = vadd.f32 1e-05, %v51_v15 }
 0x12e   :  { %v50_v17 = vpop.xlane.xlu1 %49 }
 0x12f   :  { %102 = vrsqrt.f32 %v53_v16  ;;  %v52_v18 = vmul.f32 0.03125, %v50_v17 }
 0x131   :  { %v54_v19 = vadd.f32 1e-05, %v52_v18 }
 0x133   :  { %104 = vrsqrt.f32 %v54_v19 }
 0x13c   :  { %v103_v21 = vpop.eup %102 }
 0x13d   :  { %v65_v22 = vmul.f32 %v103_v21, %v96_v20 }
 0x13f   :  { %v67_v24 = vmul.f32 %v65_v22, %v41_v6 }
 0x140   :  { %v105_v25 = vpop.eup %104 }
 0x141   :  { %v66_v26 = vmul.f32 %v105_v25, %v96_v20  ;;  %v75_v27 = vadd.f32 %v97_v23, %v67_v24 }
 0x143   :  { %v68_v28 = vmul.f32 %v66_v26, %v42_v10  ;;  %77 = vst.msk [vmem:[#allocation5] sm:$0xff] %vm31_vm0, %v75_v27 }
 0x145   :  { %v76_v29 = vadd.f32 %v97_v23, %v68_v28 }
 0x147   :  { %78 = vst.msk [vmem:[#allocation5 + $0x8] sm:$0xff] %vm31_vm0, %v76_v29 }
 0x148   :  { %137 = shalt.err (!%p134_p9)
}
 0x149   :  { %90 = dma.vmem_to_hbm [thread:$0]  %s85_s23, 256, %s201_s3, [#allocation4], %s151_s15, %s151_s15, %s152_s16  }
 0x14a   :  { %148 = dma.done.wait [#allocation4], 256  }
 0x14b   :  { %149 = vsyncadd [#allocation4], 4294967040 }
 0x14c   :  { %94 = vsyncpa [#allocation3], 1 }
 0x14d   :  { %95 = vsyncpa [#allocation4], 1 }

</bundles_post_ra>
